<compile_context>
chip_gen: v5e
topology: v5e:2x2
jax: 0.10.0
libtpu: 0.0.40
codegen_flags: <defaults>
</compile_context>

<pallas_src>
import functools

import jax
import jax.numpy as jnp
from jax import lax
from jax.experimental import pallas as pl
from jax.experimental.pallas import tpu as pltpu


# ----------------------------------------------------------------------------
# Fused Pallas kernel: whole _SparseEncoder forward for one batch element.
# ----------------------------------------------------------------------------
def _make_fused_kernel(img_h, img_w, loop, mm_dtype):
    L = img_h * img_w  # flattened (h, w) axis -> lanes

    def _hswish(v):
        return v * jnp.clip(v + 3.0, 0.0, 6.0) * (1.0 / 6.0)

    def kernel(frames_ref, events_ref, w1_ref, s1_ref, s2_ref, out_ref):
        c_in = frames_ref.shape[0]
        c_out = out_ref.shape[0]

        # Boundary masks built in-kernel (static), shape (1, L), f32.
        lane = lax.broadcasted_iota(jnp.int32, (1, L), 1)
        col = lane % img_w
        cm_left = (col >= 1).astype(jnp.float32)                 # valid for dx = -1
        cm_right = (col <= img_w - 2).astype(jnp.float32)        # valid for dx = +1
        rm_up = (lane >= img_w).astype(jnp.float32)              # valid for dy = -1
        rm_down = (lane < (img_h - 1) * img_w).astype(jnp.float32)  # valid for dy = +1

        # Hoisted full-weight loads (+ one-time cast to the matmul dtype).
        w1 = w1_ref[...].astype(mm_dtype)   # (3*C2, 3*C1)
        s1 = s1_ref[...].astype(mm_dtype)   # (3*C1, 3*C2)
        s2 = s2_ref[...].astype(mm_dtype)   # (3*C2, 3*C1)

        e = events_ref[...]                 # (C1, L)
        x1 = frames_ref[...] * e            # frames * events
        e2 = e * e                          # hoisted events^2 (loop invariant)

        def conv3x3(x, wp, cout):
            """3x3 / stride 1 / pad 1 conv on a (Cin, L) lane-dense activation.

            Separable rolls: column pass (dx = -1,0,+1 lane rolls + column
            masks), ONE concatenated MXU matmul with a (3*Cout, 3*Cin) weight,
            then row pass (dy = -1,0,+1 rolls by +-W + row masks) and sum.
            Exactly equivalent to the 9-tap zero-padded conv because the column
            masks are row-invariant and |dy|,|dx| <= 1 with pad = 1.
            """
            c_m = pltpu.roll(x, shift=1, axis=1) * cm_left        # dx = -1
            c_p = pltpu.roll(x, shift=L - 1, axis=1) * cm_right   # dx = +1
            x3 = jnp.concatenate([c_m, x, c_p], axis=0).astype(mm_dtype)
            p = jnp.dot(wp, x3, preferred_element_type=jnp.float32)  # (3*cout, L)
            q_m = pltpu.roll(p[0:cout], shift=img_w, axis=1) * rm_up          # dy = -1
            q_0 = p[cout:2 * cout]                                            # dy =  0
            q_p = pltpu.roll(p[2 * cout:3 * cout], shift=L - img_w, axis=1) * rm_down  # dy = +1
            return q_m + q_0 + q_p

        z = conv3x3(x1, w1, c_out)          # z = W1(frames*events)   (C2, L)
        tmp = z
        for _ in range(loop):               # static trip count, unrolled
            ttmp = _hswish(tmp)
            x = conv3x3(ttmp, s1, c_in)     # S1                      (C1, L)
            x = x * e2                      # x * events * events (fused)
            x = conv3x3(x, s2, c_out)       # S2                      (C2, L)
            tmp = ttmp - x + z              # (ttmp - x) + z (fused)
        out_ref[...] = _hswish(tmp)

    return kernel


# ----------------------------------------------------------------------------
# Host-side weight packing: (3,3,Cin,Cout) HWIO -> (3*Cout, 3*Cin)
#   packed[ky*Cout + co, kx*Cin + ci] = W[ky, kx, ci, co]
# ----------------------------------------------------------------------------
def _pack_weights(w_hwio):
    kh, kw, cin, cout = w_hwio.shape
    return jnp.transpose(w_hwio, (0, 3, 1, 2)).reshape(kh * cout, kw * cin)


# ----------------------------------------------------------------------------
# _SparseEncoder forward (encoder_type == 'conv')
# ----------------------------------------------------------------------------
@functools.partial(jax.jit, static_argnames=("loop", "matmul_dtype"))
def sparse_encoder_forward(frames_nchw, events_nchw, params, loop,
                           matmul_dtype="bfloat16"):
    B, C1, H, W = frames_nchw.shape
    C2 = params["W1"].shape[-1]
    L = H * W
    assert L % 128 == 0, "flattened spatial axis (H*W) must be lane aligned"

    # Free reshapes (no transposes): NCHW -> (B, C, H*W).
    fr = frames_nchw.reshape(B, C1, L)
    ev = events_nchw.reshape(B, C1, L)

    w1 = _pack_weights(params["W1"])  # (3*C2, 3*C1)
    s1 = _pack_weights(params["S1"])  # (3*C1, 3*C2)
    s2 = _pack_weights(params["S2"])  # (3*C2, 3*C1)

    def act_spec(c):
        return pl.BlockSpec((None, c, L), lambda b: (b, 0, 0))

    def w_spec(r, c):
        return pl.BlockSpec((r, c), lambda b: (0, 0))   # constant -> fetched once

    out = pl.pallas_call(
        _make_fused_kernel(H, W, loop, jnp.dtype(matmul_dtype)),
        grid=(B,),
        out_shape=jax.ShapeDtypeStruct((B, C2, L), jnp.float32),
        in_specs=[act_spec(C1), act_spec(C1),
                  w_spec(3 * C2, 3 * C1),
                  w_spec(3 * C1, 3 * C2),
                  w_spec(3 * C2, 3 * C1)],
        out_specs=act_spec(C2),
        compiler_params=pltpu.CompilerParams(
            dimension_semantics=("parallel",)),
    )(fr, ev, w1, s1, s2)

    # (B, C2, H*W) -> NCHW (free reshape).
    return out.reshape(B, C2, H, W)


# ----------------------------------------------------------------------------
# Pure-JAX reference (for correctness check)
# ----------------------------------------------------------------------------
def _ref_conv3x3(x, w):
    return lax.conv_general_dilated(
        x, w, window_strides=(1, 1), padding=((1, 1), (1, 1)),
        dimension_numbers=("NHWC", "HWIO", "NHWC"))


def _ref_hswish(x):
    return x * jnp.clip(x + 3.0, 0.0, 6.0) / 6.0


def _ref_forward(frames_nchw, events_nchw, params, loop):
    frames = jnp.transpose(frames_nchw, (0, 2, 3, 1))
    events = jnp.transpose(events_nchw, (0, 2, 3, 1))
    x1 = frames * events
    z = _ref_conv3x3(x1, params["W1"])
    tmp = z
    for _ in range(loop):
        ttmp = _ref_hswish(tmp)
        x = _ref_conv3x3(ttmp, params["S1"])
        x = x * events
        x = x * events
        x = _ref_conv3x3(x, params["S2"])
        x = ttmp - x
        tmp = x + z
    c = _ref_hswish(tmp)
    return jnp.transpose(c, (0, 3, 1, 2))


# ----------------------------------------------------------------------------
# Main
# ----------------------------------------------------------------------------
if __name__ == "__main__":
    # Module config: _SparseEncoder(C1, C2, loop, cfg.type == 'conv')
    B, C1, C2, H, W = 2, 4, 8, 16, 16
    LOOP = 2

    key = jax.random.PRNGKey(0)
    k_fr, k_ev, k_w1, k_s1, k_s2 = jax.random.split(key, 5)

    frames = jax.random.normal(k_fr, (B, C1, H, W), dtype=jnp.float32)
    events = jax.random.normal(k_ev, (B, C1, H, W), dtype=jnp.float32)

    # Deterministic synthetic weights (HWIO layout), ~Kaiming scale 1/sqrt(9*fan_in)
    def init_w(k, cin, cout):
        return jax.random.normal(k, (3, 3, cin, cout), dtype=jnp.float32) * (
            1.0 / jnp.sqrt(9.0 * cin))

    params = {
        "W1": init_w(k_w1, C1, C2),   # nn.Conv2d(C1, C2, 3, 1, 1, bias=False)
        "S1": init_w(k_s1, C2, C1),   # nn.Conv2d(C2, C1, 3, 1, 1, bias=False)
        "S2": init_w(k_s2, C1, C2),   # nn.Conv2d(C1, C2, 3, 1, 1, bias=False)
    }

    ref = _ref_forward(frames, events, params, LOOP)

    # 1) Exactness check of the separable-roll + concatenated-matmul structure
    #    with f32 MXU operands (tight tolerance).
    out_f32 = sparse_encoder_forward(frames, events, params, LOOP,
                                     matmul_dtype="float32")
    out_f32 = jax.block_until_ready(out_f32)
    assert out_f32.shape == (B, C2, H, W), out_f32.shape
    err_f32 = float(jnp.max(jnp.abs(out_f32 - ref)))
    assert jnp.allclose(out_f32, ref, atol=1e-4, rtol=1e-4), err_f32

    # 2) Production path: bf16 MXU operands (v6e/v7x advice), f32 elementwise.
    #    Compared against the f32 reference with bf16-appropriate tolerance.
    out = sparse_encoder_forward(frames, events, params, LOOP,
                                 matmul_dtype="bfloat16")
    out = jax.block_until_ready(out)
    assert out.shape == (B, C2, H, W), out.shape
    err_bf16 = float(jnp.max(jnp.abs(out - ref)))
    assert jnp.allclose(out, ref, atol=5e-2, rtol=5e-2), err_bf16

    # TODO(synk): 'spatial_temporal_attention' / 'swin_transformer_*' encoder
    # types depend on external swin_transformer_layers and are not implemented;
    # only the 'conv' encoder type is realized here.
    print("KERNEL_OK")
</pallas_src>

<mosaic_0001>
module attributes {stable_mosaic.version = 11 : i64} {
  func.func @kernel(%arg0: i32, %arg1: memref<1x4x256xf32, #tpu.memory_space<vmem>>, %arg2: memref<1x4x256xf32, #tpu.memory_space<vmem>>, %arg3: memref<24x12xf32, #tpu.memory_space<vmem>>, %arg4: memref<12x24xf32, #tpu.memory_space<vmem>>, %arg5: memref<24x12xf32, #tpu.memory_space<vmem>>, %arg6: memref<1x8x256xf32, #tpu.memory_space<vmem>>) attributes {dimension_semantics = [#tpu.dimension_semantics<parallel>], iteration_bounds = array<i64: 2>, scalar_prefetch = 0 : i64, scratch_operands = 0 : i64, tpu.core_type = #tpu.core_type<tc>, window_params = [{transform_indices = @transform_0, window_bounds = array<i64: 1, 4, 256>}, {transform_indices = @transform_1, window_bounds = array<i64: 1, 4, 256>}, {pipeline_mode = #tpu.pipeline_mode<synchronous>, transform_indices = @transform_2, window_bounds = array<i64: 24, 12>}, {pipeline_mode = #tpu.pipeline_mode<synchronous>, transform_indices = @transform_3, window_bounds = array<i64: 12, 24>}, {pipeline_mode = #tpu.pipeline_mode<synchronous>, transform_indices = @transform_4, window_bounds = array<i64: 24, 12>}, {transform_indices = @transform_5, window_bounds = array<i64: 1, 8, 256>}]} {
    %0 = tpu.iota {dimensions = array<i32: 1>} : vector<1x256xi32>
    %c16_i32 = arith.constant 16 : i32
    %c0_i32 = arith.constant 0 : i32
    %1 = arith.cmpi eq, %c16_i32, %c0_i32 : i32
    %c1_i32 = arith.constant 1 : i32
    %2 = arith.select %1, %c1_i32, %c16_i32 : i32
    %3 = vector.broadcast %2 : i32 to vector<1x256xi32>
    %4 = arith.remsi %0, %3 : vector<1x256xi32>
    %c0_i32_0 = arith.constant 0 : i32
    %5 = vector.broadcast %c0_i32_0 : i32 to vector<1x256xi32>
    %6 = arith.cmpi ne, %4, %5 : vector<1x256xi32>
    %c0_i32_1 = arith.constant 0 : i32
    %7 = vector.broadcast %c0_i32_1 : i32 to vector<1x256xi32>
    %8 = arith.cmpi slt, %4, %7 : vector<1x256xi32>
    %c0_i32_2 = arith.constant 0 : i32
    %9 = arith.cmpi slt, %2, %c0_i32_2 : i32
    %10 = vector.broadcast %9 : i1 to vector<1x256xi1>
    %11 = vector.broadcast %10 : vector<1x256xi1> to vector<1x256xi1>
    %12 = arith.xori %8, %11 : vector<1x256xi1>
    %13 = arith.andi %12, %6 : vector<1x256xi1>
    %14 = vector.broadcast %2 : i32 to vector<1x256xi32>
    %15 = arith.addi %4, %14 : vector<1x256xi32>
    %16 = arith.select %13, %15, %4 : vector<1x256xi1>, vector<1x256xi32>
    %c1_i32_3 = arith.constant 1 : i32
    %17 = vector.broadcast %c1_i32_3 : i32 to vector<1x256xi32>
    %18 = arith.cmpi sge, %16, %17 : vector<1x256xi32>
    %19 = arith.extui %18 : vector<1x256xi1> to vector<1x256xi32>
    %20 = arith.sitofp %19 : vector<1x256xi32> to vector<1x256xf32>
    %c14_i32 = arith.constant 14 : i32
    %21 = vector.broadcast %c14_i32 : i32 to vector<1x256xi32>
    %22 = arith.cmpi sle, %16, %21 : vector<1x256xi32>
    %23 = arith.extui %22 : vector<1x256xi1> to vector<1x256xi32>
    %24 = arith.sitofp %23 : vector<1x256xi32> to vector<1x256xf32>
    %c16_i32_4 = arith.constant 16 : i32
    %25 = vector.broadcast %c16_i32_4 : i32 to vector<1x256xi32>
    %26 = arith.cmpi sge, %0, %25 : vector<1x256xi32>
    %27 = arith.extui %26 : vector<1x256xi1> to vector<1x256xi32>
    %28 = arith.sitofp %27 : vector<1x256xi32> to vector<1x256xf32>
    %c240_i32 = arith.constant 240 : i32
    %29 = vector.broadcast %c240_i32 : i32 to vector<1x256xi32>
    %30 = arith.cmpi slt, %0, %29 : vector<1x256xi32>
    %31 = arith.extui %30 : vector<1x256xi1> to vector<1x256xi32>
    %32 = arith.sitofp %31 : vector<1x256xi32> to vector<1x256xf32>
    %c0 = arith.constant 0 : index
    %c0_5 = arith.constant 0 : index
    %33 = vector.load %arg3[%c0, %c0_5] : memref<24x12xf32, #tpu.memory_space<vmem>>, vector<24x12xf32>
    %c0_6 = arith.constant 0 : index
    %c0_7 = arith.constant 0 : index
    %34 = vector.load %arg4[%c0_6, %c0_7] : memref<12x24xf32, #tpu.memory_space<vmem>>, vector<12x24xf32>
    %c0_8 = arith.constant 0 : index
    %c0_9 = arith.constant 0 : index
    %35 = vector.load %arg5[%c0_8, %c0_9] : memref<24x12xf32, #tpu.memory_space<vmem>>, vector<24x12xf32>
    %c0_10 = arith.constant 0 : index
    %c0_11 = arith.constant 0 : index
    %c0_12 = arith.constant 0 : index
    %36 = vector.load %arg2[%c0_10, %c0_11, %c0_12] : memref<1x4x256xf32, #tpu.memory_space<vmem>>, vector<1x4x256xf32>
    %37 = vector.shape_cast %36 : vector<1x4x256xf32> to vector<4x256xf32>
    %c0_13 = arith.constant 0 : index
    %c0_14 = arith.constant 0 : index
    %c0_15 = arith.constant 0 : index
    %38 = vector.load %arg1[%c0_13, %c0_14, %c0_15] : memref<1x4x256xf32, #tpu.memory_space<vmem>>, vector<1x4x256xf32>
    %39 = vector.shape_cast %38 : vector<1x4x256xf32> to vector<4x256xf32>
    %40 = arith.mulf %39, %37 : vector<4x256xf32>
    %41 = arith.mulf %37, %37 : vector<4x256xf32>
    %c1_i32_16 = arith.constant 1 : i32
    %42 = tpu.dynamic_rotate %40 by %c1_i32_16 dim 1 : vector<4x256xf32>, i32 -> vector<4x256xf32>
    %43 = vector.broadcast %20 : vector<1x256xf32> to vector<4x256xf32>
    %44 = arith.mulf %42, %43 : vector<4x256xf32>
    %c255_i32 = arith.constant 255 : i32
    %45 = tpu.dynamic_rotate %40 by %c255_i32 dim 1 : vector<4x256xf32>, i32 -> vector<4x256xf32>
    %46 = vector.broadcast %24 : vector<1x256xf32> to vector<4x256xf32>
    %47 = arith.mulf %45, %46 : vector<4x256xf32>
    %48 = tpu.concatenate %44, %40, %47 in 0 : vector<4x256xf32>, vector<4x256xf32>, vector<4x256xf32> -> vector<12x256xf32>
    %cst = arith.constant dense<0.000000e+00> : vector<24x256xf32>
    %49 = tpu.matmul %33, %48, %cst {dimension_numbers = #tpu.dot_dimension_numbers<[1], [0], [0], [1], [0, 0, 1, 1], [], []>} : vector<24x12xf32>, vector<12x256xf32>, vector<24x256xf32> -> vector<24x256xf32>
    %50 = vector.extract_strided_slice %49 {offsets = [0, 0], sizes = [8, 256], strides = [1, 1]} : vector<24x256xf32> to vector<8x256xf32>
    %c16_i32_17 = arith.constant 16 : i32
    %51 = tpu.dynamic_rotate %50 by %c16_i32_17 dim 1 : vector<8x256xf32>, i32 -> vector<8x256xf32>
    %52 = vector.broadcast %28 : vector<1x256xf32> to vector<8x256xf32>
    %53 = arith.mulf %51, %52 : vector<8x256xf32>
    %54 = vector.extract_strided_slice %49 {offsets = [8, 0], sizes = [8, 256], strides = [1, 1]} : vector<24x256xf32> to vector<8x256xf32>
    %55 = vector.extract_strided_slice %49 {offsets = [16, 0], sizes = [8, 256], strides = [1, 1]} : vector<24x256xf32> to vector<8x256xf32>
    %c240_i32_18 = arith.constant 240 : i32
    %56 = tpu.dynamic_rotate %55 by %c240_i32_18 dim 1 : vector<8x256xf32>, i32 -> vector<8x256xf32>
    %57 = vector.broadcast %32 : vector<1x256xf32> to vector<8x256xf32>
    %58 = arith.mulf %56, %57 : vector<8x256xf32>
    %59 = arith.addf %53, %54 : vector<8x256xf32>
    %60 = arith.addf %59, %58 : vector<8x256xf32>
    %cst_19 = arith.constant 3.000000e+00 : f32
    %61 = vector.broadcast %cst_19 : f32 to vector<8x256xf32>
    %62 = arith.addf %60, %61 : vector<8x256xf32>
    %cst_20 = arith.constant 0.000000e+00 : f32
    %cst_21 = arith.constant 6.000000e+00 : f32
    %63 = vector.broadcast %cst_20 : f32 to vector<8x256xf32>
    %64 = arith.maximumf %63, %62 : vector<8x256xf32>
    %65 = vector.broadcast %cst_21 : f32 to vector<8x256xf32>
    %66 = arith.minimumf %65, %64 : vector<8x256xf32>
    %67 = arith.mulf %60, %66 : vector<8x256xf32>
    %cst_22 = arith.constant 0.166666672 : f32
    %68 = vector.broadcast %cst_22 : f32 to vector<8x256xf32>
    %69 = arith.mulf %67, %68 : vector<8x256xf32>
    %c1_i32_23 = arith.constant 1 : i32
    %70 = tpu.dynamic_rotate %69 by %c1_i32_23 dim 1 : vector<8x256xf32>, i32 -> vector<8x256xf32>
    %71 = vector.broadcast %20 : vector<1x256xf32> to vector<8x256xf32>
    %72 = arith.mulf %70, %71 : vector<8x256xf32>
    %c255_i32_24 = arith.constant 255 : i32
    %73 = tpu.dynamic_rotate %69 by %c255_i32_24 dim 1 : vector<8x256xf32>, i32 -> vector<8x256xf32>
    %74 = vector.broadcast %24 : vector<1x256xf32> to vector<8x256xf32>
    %75 = arith.mulf %73, %74 : vector<8x256xf32>
    %76 = tpu.concatenate %72, %69, %75 in 0 : vector<8x256xf32>, vector<8x256xf32>, vector<8x256xf32> -> vector<24x256xf32>
    %cst_25 = arith.constant dense<0.000000e+00> : vector<12x256xf32>
    %77 = tpu.matmul %34, %76, %cst_25 {dimension_numbers = #tpu.dot_dimension_numbers<[1], [0], [0], [1], [0, 0, 1, 1], [], []>} : vector<12x24xf32>, vector<24x256xf32>, vector<12x256xf32> -> vector<12x256xf32>
    %78 = vector.extract_strided_slice %77 {offsets = [0, 0], sizes = [4, 256], strides = [1, 1]} : vector<12x256xf32> to vector<4x256xf32>
    %c16_i32_26 = arith.constant 16 : i32
    %79 = tpu.dynamic_rotate %78 by %c16_i32_26 dim 1 : vector<4x256xf32>, i32 -> vector<4x256xf32>
    %80 = vector.broadcast %28 : vector<1x256xf32> to vector<4x256xf32>
    %81 = arith.mulf %79, %80 : vector<4x256xf32>
    %82 = vector.extract_strided_slice %77 {offsets = [4, 0], sizes = [4, 256], strides = [1, 1]} : vector<12x256xf32> to vector<4x256xf32>
    %83 = vector.extract_strided_slice %77 {offsets = [8, 0], sizes = [4, 256], strides = [1, 1]} : vector<12x256xf32> to vector<4x256xf32>
    %c240_i32_27 = arith.constant 240 : i32
    %84 = tpu.dynamic_rotate %83 by %c240_i32_27 dim 1 : vector<4x256xf32>, i32 -> vector<4x256xf32>
    %85 = vector.broadcast %32 : vector<1x256xf32> to vector<4x256xf32>
    %86 = arith.mulf %84, %85 : vector<4x256xf32>
    %87 = arith.addf %81, %82 : vector<4x256xf32>
    %88 = arith.addf %87, %86 : vector<4x256xf32>
    %89 = arith.mulf %88, %41 : vector<4x256xf32>
    %c1_i32_28 = arith.constant 1 : i32
    %90 = tpu.dynamic_rotate %89 by %c1_i32_28 dim 1 : vector<4x256xf32>, i32 -> vector<4x256xf32>
    %91 = vector.broadcast %20 : vector<1x256xf32> to vector<4x256xf32>
    %92 = arith.mulf %90, %91 : vector<4x256xf32>
    %c255_i32_29 = arith.constant 255 : i32
    %93 = tpu.dynamic_rotate %89 by %c255_i32_29 dim 1 : vector<4x256xf32>, i32 -> vector<4x256xf32>
    %94 = vector.broadcast %24 : vector<1x256xf32> to vector<4x256xf32>
    %95 = arith.mulf %93, %94 : vector<4x256xf32>
    %96 = tpu.concatenate %92, %89, %95 in 0 : vector<4x256xf32>, vector<4x256xf32>, vector<4x256xf32> -> vector<12x256xf32>
    %cst_30 = arith.constant dense<0.000000e+00> : vector<24x256xf32>
    %97 = tpu.matmul %35, %96, %cst_30 {dimension_numbers = #tpu.dot_dimension_numbers<[1], [0], [0], [1], [0, 0, 1, 1], [], []>} : vector<24x12xf32>, vector<12x256xf32>, vector<24x256xf32> -> vector<24x256xf32>
    %98 = vector.extract_strided_slice %97 {offsets = [0, 0], sizes = [8, 256], strides = [1, 1]} : vector<24x256xf32> to vector<8x256xf32>
    %c16_i32_31 = arith.constant 16 : i32
    %99 = tpu.dynamic_rotate %98 by %c16_i32_31 dim 1 : vector<8x256xf32>, i32 -> vector<8x256xf32>
    %100 = vector.broadcast %28 : vector<1x256xf32> to vector<8x256xf32>
    %101 = arith.mulf %99, %100 : vector<8x256xf32>
    %102 = vector.extract_strided_slice %97 {offsets = [8, 0], sizes = [8, 256], strides = [1, 1]} : vector<24x256xf32> to vector<8x256xf32>
    %103 = vector.extract_strided_slice %97 {offsets = [16, 0], sizes = [8, 256], strides = [1, 1]} : vector<24x256xf32> to vector<8x256xf32>
    %c240_i32_32 = arith.constant 240 : i32
    %104 = tpu.dynamic_rotate %103 by %c240_i32_32 dim 1 : vector<8x256xf32>, i32 -> vector<8x256xf32>
    %105 = vector.broadcast %32 : vector<1x256xf32> to vector<8x256xf32>
    %106 = arith.mulf %104, %105 : vector<8x256xf32>
    %107 = arith.addf %101, %102 : vector<8x256xf32>
    %108 = arith.addf %107, %106 : vector<8x256xf32>
    %109 = arith.subf %69, %108 : vector<8x256xf32>
    %110 = arith.addf %109, %60 : vector<8x256xf32>
    %cst_33 = arith.constant 3.000000e+00 : f32
    %111 = vector.broadcast %cst_33 : f32 to vector<8x256xf32>
    %112 = arith.addf %110, %111 : vector<8x256xf32>
    %cst_34 = arith.constant 0.000000e+00 : f32
    %cst_35 = arith.constant 6.000000e+00 : f32
    %113 = vector.broadcast %cst_34 : f32 to vector<8x256xf32>
    %114 = arith.maximumf %113, %112 : vector<8x256xf32>
    %115 = vector.broadcast %cst_35 : f32 to vector<8x256xf32>
    %116 = arith.minimumf %115, %114 : vector<8x256xf32>
    %117 = arith.mulf %110, %116 : vector<8x256xf32>
    %cst_36 = arith.constant 0.166666672 : f32
    %118 = vector.broadcast %cst_36 : f32 to vector<8x256xf32>
    %119 = arith.mulf %117, %118 : vector<8x256xf32>
    %c1_i32_37 = arith.constant 1 : i32
    %120 = tpu.dynamic_rotate %119 by %c1_i32_37 dim 1 : vector<8x256xf32>, i32 -> vector<8x256xf32>
    %121 = vector.broadcast %20 : vector<1x256xf32> to vector<8x256xf32>
    %122 = arith.mulf %120, %121 : vector<8x256xf32>
    %c255_i32_38 = arith.constant 255 : i32
    %123 = tpu.dynamic_rotate %119 by %c255_i32_38 dim 1 : vector<8x256xf32>, i32 -> vector<8x256xf32>
    %124 = vector.broadcast %24 : vector<1x256xf32> to vector<8x256xf32>
    %125 = arith.mulf %123, %124 : vector<8x256xf32>
    %126 = tpu.concatenate %122, %119, %125 in 0 : vector<8x256xf32>, vector<8x256xf32>, vector<8x256xf32> -> vector<24x256xf32>
    %cst_39 = arith.constant dense<0.000000e+00> : vector<12x256xf32>
    %127 = tpu.matmul %34, %126, %cst_39 {dimension_numbers = #tpu.dot_dimension_numbers<[1], [0], [0], [1], [0, 0, 1, 1], [], []>} : vector<12x24xf32>, vector<24x256xf32>, vector<12x256xf32> -> vector<12x256xf32>
    %128 = vector.extract_strided_slice %127 {offsets = [0, 0], sizes = [4, 256], strides = [1, 1]} : vector<12x256xf32> to vector<4x256xf32>
    %c16_i32_40 = arith.constant 16 : i32
    %129 = tpu.dynamic_rotate %128 by %c16_i32_40 dim 1 : vector<4x256xf32>, i32 -> vector<4x256xf32>
    %130 = vector.broadcast %28 : vector<1x256xf32> to vector<4x256xf32>
    %131 = arith.mulf %129, %130 : vector<4x256xf32>
    %132 = vector.extract_strided_slice %127 {offsets = [4, 0], sizes = [4, 256], strides = [1, 1]} : vector<12x256xf32> to vector<4x256xf32>
    %133 = vector.extract_strided_slice %127 {offsets = [8, 0], sizes = [4, 256], strides = [1, 1]} : vector<12x256xf32> to vector<4x256xf32>
    %c240_i32_41 = arith.constant 240 : i32
    %134 = tpu.dynamic_rotate %133 by %c240_i32_41 dim 1 : vector<4x256xf32>, i32 -> vector<4x256xf32>
    %135 = vector.broadcast %32 : vector<1x256xf32> to vector<4x256xf32>
    %136 = arith.mulf %134, %135 : vector<4x256xf32>
    %137 = arith.addf %131, %132 : vector<4x256xf32>
    %138 = arith.addf %137, %136 : vector<4x256xf32>
    %139 = arith.mulf %138, %41 : vector<4x256xf32>
    %c1_i32_42 = arith.constant 1 : i32
    %140 = tpu.dynamic_rotate %139 by %c1_i32_42 dim 1 : vector<4x256xf32>, i32 -> vector<4x256xf32>
    %141 = vector.broadcast %20 : vector<1x256xf32> to vector<4x256xf32>
    %142 = arith.mulf %140, %141 : vector<4x256xf32>
    %c255_i32_43 = arith.constant 255 : i32
    %143 = tpu.dynamic_rotate %139 by %c255_i32_43 dim 1 : vector<4x256xf32>, i32 -> vector<4x256xf32>
    %144 = vector.broadcast %24 : vector<1x256xf32> to vector<4x256xf32>
    %145 = arith.mulf %143, %144 : vector<4x256xf32>
    %146 = tpu.concatenate %142, %139, %145 in 0 : vector<4x256xf32>, vector<4x256xf32>, vector<4x256xf32> -> vector<12x256xf32>
    %cst_44 = arith.constant dense<0.000000e+00> : vector<24x256xf32>
    %147 = tpu.matmul %35, %146, %cst_44 {dimension_numbers = #tpu.dot_dimension_numbers<[1], [0], [0], [1], [0, 0, 1, 1], [], []>} : vector<24x12xf32>, vector<12x256xf32>, vector<24x256xf32> -> vector<24x256xf32>
    %148 = vector.extract_strided_slice %147 {offsets = [0, 0], sizes = [8, 256], strides = [1, 1]} : vector<24x256xf32> to vector<8x256xf32>
    %c16_i32_45 = arith.constant 16 : i32
    %149 = tpu.dynamic_rotate %148 by %c16_i32_45 dim 1 : vector<8x256xf32>, i32 -> vector<8x256xf32>
    %150 = vector.broadcast %28 : vector<1x256xf32> to vector<8x256xf32>
    %151 = arith.mulf %149, %150 : vector<8x256xf32>
    %152 = vector.extract_strided_slice %147 {offsets = [8, 0], sizes = [8, 256], strides = [1, 1]} : vector<24x256xf32> to vector<8x256xf32>
    %153 = vector.extract_strided_slice %147 {offsets = [16, 0], sizes = [8, 256], strides = [1, 1]} : vector<24x256xf32> to vector<8x256xf32>
    %c240_i32_46 = arith.constant 240 : i32
    %154 = tpu.dynamic_rotate %153 by %c240_i32_46 dim 1 : vector<8x256xf32>, i32 -> vector<8x256xf32>
    %155 = vector.broadcast %32 : vector<1x256xf32> to vector<8x256xf32>
    %156 = arith.mulf %154, %155 : vector<8x256xf32>
    %157 = arith.addf %151, %152 : vector<8x256xf32>
    %158 = arith.addf %157, %156 : vector<8x256xf32>
    %159 = arith.subf %119, %158 : vector<8x256xf32>
    %160 = arith.addf %159, %60 : vector<8x256xf32>
    %cst_47 = arith.constant 3.000000e+00 : f32
    %161 = vector.broadcast %cst_47 : f32 to vector<8x256xf32>
    %162 = arith.addf %160, %161 : vector<8x256xf32>
    %cst_48 = arith.constant 0.000000e+00 : f32
    %cst_49 = arith.constant 6.000000e+00 : f32
    %163 = vector.broadcast %cst_48 : f32 to vector<8x256xf32>
    %164 = arith.maximumf %163, %162 : vector<8x256xf32>
    %165 = vector.broadcast %cst_49 : f32 to vector<8x256xf32>
    %166 = arith.minimumf %165, %164 : vector<8x256xf32>
    %167 = arith.mulf %160, %166 : vector<8x256xf32>
    %cst_50 = arith.constant 0.166666672 : f32
    %168 = vector.broadcast %cst_50 : f32 to vector<8x256xf32>
    %169 = arith.mulf %167, %168 : vector<8x256xf32>
    %c0_51 = arith.constant 0 : index
    %c0_52 = arith.constant 0 : index
    %c0_53 = arith.constant 0 : index
    %170 = vector.load %arg6[%c0_51, %c0_52, %c0_53] : memref<1x8x256xf32, #tpu.memory_space<vmem>>, vector<1x8x256xf32>
    %171 = vector.shape_cast %170 : vector<1x8x256xf32> to vector<8x256xf32>
    %172 = vector.shape_cast %169 : vector<8x256xf32> to vector<1x8x256xf32>
    tpu.vector_store %arg6[%c0_51, %c0_52, %c0_53], %172 {strides = array<i32>} : memref<1x8x256xf32, #tpu.memory_space<vmem>>, vector<1x8x256xf32>,
    return
  }
  func.func @transform_0(%arg0: i32) -> (i32, i32, i32) {
    %c0_i32 = arith.constant 0 : i32
    %c0_i32_0 = arith.constant 0 : i32
    %c0_i32_1 = arith.constant 0 : i32
    return %arg0, %c0_i32, %c0_i32_0 : i32, i32, i32
  }
  func.func @transform_1(%arg0: i32) -> (i32, i32, i32) {
    %c0_i32 = arith.constant 0 : i32
    %c0_i32_0 = arith.constant 0 : i32
    %c0_i32_1 = arith.constant 0 : i32
    return %arg0, %c0_i32, %c0_i32_0 : i32, i32, i32
  }
  func.func @transform_2(%arg0: i32) -> (i32, i32) {
    %c0_i32 = arith.constant 0 : i32
    %c0_i32_0 = arith.constant 0 : i32
    %c0_i32_1 = arith.constant 0 : i32
    return %c0_i32, %c0_i32_0 : i32, i32
  }
  func.func @transform_3(%arg0: i32) -> (i32, i32) {
    %c0_i32 = arith.constant 0 : i32
    %c0_i32_0 = arith.constant 0 : i32
    %c0_i32_1 = arith.constant 0 : i32
    return %c0_i32, %c0_i32_0 : i32, i32
  }
  func.func @transform_4(%arg0: i32) -> (i32, i32) {
    %c0_i32 = arith.constant 0 : i32
    %c0_i32_0 = arith.constant 0 : i32
    %c0_i32_1 = arith.constant 0 : i32
    return %c0_i32, %c0_i32_0 : i32, i32
  }
  func.func @transform_5(%arg0: i32) -> (i32, i32, i32) {
    %c0_i32 = arith.constant 0 : i32
    %c0_i32_0 = arith.constant 0 : i32
    %c0_i32_1 = arith.constant 0 : i32
    return %arg0, %c0_i32, %c0_i32_0 : i32, i32, i32
  }
}

</mosaic_0001>

<bundles_post_ra>
// kernel: sparse_encoder_forward.1
= control target key start
LH: loop header
LB: loop body
LE: loop exit
PB: predicated region body
PF: predicated region fallthrough
CT: control target
= control target key end

     0   :  { %s1068_s18 = smov 0   ;;  %s1401_s0 = inlined_call_operand.vmem [shape: f32[2,4,256], index: 0, kind: input, shape index: {}]   ;;  %s1402_s1 = inlined_call_operand.vmem [shape: f32[2,4,256], index: 1, kind: input, shape index: {}]   ;;  %s1403_s2 = inlined_call_operand.vmem [shape: f32[24,12], index: 2, kind: input, shape index: {}]   ;;  %s1404_s3 = inlined_call_operand.vmem [shape: f32[12,24], index: 3, kind: input, shape index: {}]   ;;  %s1405_s4 = inlined_call_operand.vmem [shape: f32[24,12], index: 4, kind: input, shape index: {}]   ;;  %s1406_s5 = inlined_call_operand.vmem [shape: f32[2,8,256], index: 5, kind: output, shape index: {}]  }
   0x1 LB: > { %s954_s19 = sadd.s32 4294967295, %s1031_s18   ;;  %p958_p0 = scmp.ge.s32.totalorder %s1031_s18, 1  ;;  %s1031_s18 = sphi %s1068_s18, %s15_s18  }
   0x2   : > { %p197_p1 = scmp.lt.s32.totalorder %s1031_s18, 3 }
   0x4   : > { %p198_p2 = pnand %p958_p0, %p197_p1 }
   0x5   : > { %p230_p3 = scmp.lt.s32.totalorder (!%p198_p2), %s954_s19, 1  ;;  %s1033_s27 = smov (!%p198_p2), 1  }
   0x6   : > { %201 = sbr.rel (%p198_p2) target bundleno = 2007 (0x7d7), region = 40  ;;  %s1034_s28 = smov (!%p198_p2), 127  }
   0x7   : > { %s1036_s10 = smov (!%p198_p2), 16   ;;  %s1037_s11 = smov (!%p198_p2), 112  }
   0xb   : > { %s1408_s19 = smov (!%p230_p3, %s954_s19), 1  ;;  %v245_v10 = vlaneseq  ;;  %v1035_v18 = vmov 0.0   ;;  %vm343_vm6 = vcmask 1043456   ;;  %v296_v33 = vld [vmem:[%s1403_s2] sm:$0xff]  ;;  %vm346_vm7 = vcmask 97280   ;;  %v297_v34 = vld [vmem:[%s1403_s2 + $0x8] sm:$0xff] }
   0xc   : > { %s1005_s20 = sshll.u32 %s1408_s19, 3  ;;  %v298_v36 = vld [vmem:[%s1403_s2 + $0x10] sm:$0xff]  ;;  %vm462_vm12 = vcmask 195584   ;;  %s1007_s24 = sshll.u32 %s1408_s19, 4 }
   0xd   : > { %s234_s23 = scalar_lea.vmem %s1401_s0, %s1005_s20  ;;  %s239_s26 = scalar_lea.vmem %s1402_s1, %s1005_s20  ;;  %v1092_v11 = vand.u32 127, %v245_v10 }
   0xe   : > { %v304_v0 = vld [vmem:[%s239_s26] sm:$0xff] }
   0xf   : > { %v305_v1 = vld [vmem:[%s234_s23] sm:$0xff]  ;;  %v1089_v7 = vmul.f32 %v304_v0, %v304_v0  ;;  %v1095_v13 = vadd.s32 128, %v1092_v11  ;;  %v252_v14 = vand.u32 15, %v1092_v11  ;;  %vm318_vm1 = vcmp.lt.s32.totalorder %v1092_v11, 1 }
  0x10   : > { %v306_v2 = vmul.f32 %v305_v1, %v304_v0  ;;  %vm332_vm5 = vcmp.lt.s32.totalorder %v1092_v11, 127  ;;  %vm284_vm8 = vcmp.ge.s32.totalorder %v1092_v11, 16  ;;  %vm418_vm9 = vcmp.lt.s32.totalorder %v1092_v11, 16 }
  0x11   : > { %v259_v16 = vand.u32 15, %v1095_v13  ;;  %vm272_vm0 = vcmp.ge.s32.totalorder %v252_v14, 1  ;;  %vm278_vm3 = vcmp.le.s32.totalorder %v252_v14, 14  ;;  %v1148_v45 = vsel %vm284_vm8, 1.0, %v1035_v18 }
  0x12   : > { %309 = vst [vmem:[#allocation1] ss:$2 sm:$0xff] %v306_v2  ;;  %v1100_v19 = vsel %vm272_vm0, 1.0, %v1035_v18  ;;  %v1109_v23 = vsel %vm278_vm3, 1.0, %v1035_v18  ;;  %vm291_vm10 = vcmp.lt.s32.totalorder %v1095_v13, 240  ;;  %vm427_vm11 = vcmp.lt.s32.totalorder %v1092_v11, 112 }
  0x13   : > { %vm273_vm2 = vcmp.ge.s32.totalorder %v259_v16, 1  ;;  %vm279_vm4 = vcmp.le.s32.totalorder %v259_v16, 14  ;;  %v1157_v49 = vsel %vm291_vm10, 1.0, %v1035_v18 }
  0x14   : > { %v1105_v21 = vsel %vm273_vm2, 1.0, %v1035_v18  ;;  %v1111_v24 = vsel %vm279_vm4, 1.0, %v1035_v18 }
  0x19   : > { %v310_v3 = vld.sshfl [vmem:[#allocation1] sm:$0xff pattern:$0x75316420]  ;;  %v311_v4 = vld.sshfl [vmem:[#allocation1 + $0x8] sm:$0xff pattern:$0x75316420] }
  0x1a   : > { %314 = vrot.lane.b32.xlu1 %v310_v3, %s1033_s27  ;;  %323 = vst [vmem:[#allocation1] ss:$2 sm:$0xff] %v306_v2 }
  0x21   : > { %v324_v5 = vld.sshfl [vmem:[#allocation1] sm:$0xff pattern:$0x75316420]  ;;  %v325_v6 = vld.sshfl [vmem:[#allocation1 + $0x8] sm:$0xff pattern:$0x75316420] }
  0x22   : > { %328 = vrot.lane.b32.xlu0 %v324_v5, %s1034_s28  ;;  %316 = vrot.lane.b32.xlu1 %v311_v4, %s1033_s27  ;;  %338 = vst [vmem:[#allocation1 + $0x1] ss:$2 sm:$0xff] %v306_v2 }
  0x29   : > { %v339_v8 = vld.sshfl [vmem:[#allocation1] sm:$0xff pattern:$0x75316420]  ;;  %v340_v9 = vld.sshfl [vmem:[#allocation1 + $0x8] sm:$0xff pattern:$0x75316420] }
  0x2a   : > { %330 = vrot.lane.b32.xlu0 %v325_v6, %s1034_s28  ;;  %542 = vst [vmem:[#allocation1] ss:$2 sm:$0xff] %v1089_v7 }
  0x8c   : > { %v315_v12 = vpop.permute.xlu1 %314 }
  0x94   : > { %v329_v15 = vpop.permute.xlu0 %328  ;;  %v317_v17 = vpop.permute.xlu1 %316 }
  0x95   : > { %v320_v20 = vsel %vm318_vm1, %v317_v17, %v315_v12  ;;  %v319_v22 = vsel %vm318_vm1, %v315_v12, %v317_v17 }
  0x96   : > { %v321_v26 = vmul.f32 %v1100_v19, %v320_v20  ;;  %v322_v29 = vmul.f32 %v1105_v21, %v319_v22  ;;  %v1201_v20 = vld [vmem:[%s1404_s3] sm:$0xff]  ;;  %v1210_v22 = vld [vmem:[%s1404_s3 + $0x8] sm:$0xf] }
  0x98   : > { %v344_v32 = vsel %vm343_vm6, %v321_v26, %v339_v8  ;;  %v345_v35 = vsel %vm343_vm6, %v322_v29, %v340_v9  ;;  %v543_v29 = vld.sshfl [vmem:[#allocation1] sm:$0xff pattern:$0x75316420] }
  0x9c   : > { %v331_v25 = vpop.permute.xlu0 %330 }
  0x9d   : > { %v333_v27 = vsel %vm332_vm5, %v329_v15, %v331_v25  ;;  %v334_v28 = vsel %vm332_vm5, %v331_v25, %v329_v15 }
  0x9e   : > { %v335_v30 = vmul.f32 %v1109_v23, %v333_v27  ;;  %v336_v31 = vmul.f32 %v1111_v24, %v334_v28 }
  0xa0   : > { %971 = vmatpush.msk.msra.mxu0 %vm343_vm6, %v335_v30  ;;  %1008 = vmatpush.msk.msra.mxu2 %vm343_vm6, %v335_v30  ;;  %v544_v30 = vld.sshfl [vmem:[#allocation1 + $0x8] sm:$0xff pattern:$0x75316420] }
  0xa1   : > { %975 = vmatpush.msk.msra.mxu1 %vm343_vm6, %v336_v31  ;;  %1010 = vmatpush.msk.msra.mxu3 %vm343_vm6, %v336_v31  ;;  %762 = vst [vmem:[#allocation1] ss:$2 sm:$0xff] %v1089_v7 }
  0xa2   : > { %377 = vmatpush.msra.mxu0 %v344_v32  ;;  %1009 = vmatpush.msra.mxu2 %v344_v32 }
  0xa3   : > { %403 = vmatpush.msra.mxu1 %v345_v35  ;;  %1011 = vmatpush.msra.mxu3 %v345_v35 }
  0xa4   : > { %972 = vmatmul.msk.f32.vlgmr.msra.gmra.mxu0 %vm346_vm7, %v296_v33  ;;  %973 = vmatmul.msk.f32.vlgmr.msra.gmra.mxu2 %vm346_vm7, %v297_v34 }
  0xa5   : > { %977 = vmatmul.msk.f32.vlgmr.msra.gmra.mxu3 %vm346_vm7, %v297_v34  ;;  %976 = vmatmul.msk.f32.vlgmr.msra.gmra.mxu1 %vm346_vm7, %v296_v33 }
  0xac   : > { %974 = vmatmul.msk.f32.gmra.mxu2 %vm346_vm7, %v298_v36 }
  0xad   : > { %978 = vmatmul.msk.f32.gmra.mxu3 %vm346_vm7, %v298_v36 }
 0x121   : > { %v379_v37 = vpop.f32.mrf.mxu0 }
 0x122   : > { %414 = vrot.lane.b32.xlu2 %v379_v37, %s1036_s10  ;;  %v405_v39 = vpop.f32.mrf.mxu1 }
 0x127   : > { %v382_v38 = vpop.f32.mrf.mxu2 }
 0x128   : > { %v408_v40 = vpop.f32.mrf.mxu3 }
 0x12a   : > { %416 = vrot.lane.b32.xlu2 %v405_v39, %s1036_s10 }
 0x12f   : > { %v385_v41 = vpop.f32.mrf.mxu2 }
 0x130   : > { %v411_v42 = vpop.f32.mrf.mxu3  ;;  %423 = vrot.lane.b32.xlu0 %v385_v41, %s1037_s11 }
 0x131   : > { %425 = vrot.lane.b32.xlu1 %v411_v42, %s1037_s11 }
 0x17c   : > { %v415_v43 = vpop.permute.xlu2 %414 }
 0x184   : > { %v417_v44 = vpop.permute.xlu2 %416 }
 0x185   : > { %v420_v46 = vsel %vm418_vm9, %v417_v44, %v415_v43  ;;  %v419_v48 = vsel %vm418_vm9, %v415_v43, %v417_v44 }
 0x186   : > { %v421_v47 = vmul.f32 %v1148_v45, %v420_v46  ;;  %v433_v55 = vadd.f32 %v419_v48, %v408_v40 }
 0x188   : > { %v432_v52 = vadd.f32 %v421_v47, %v382_v38 }
 0x1a2   : > { %v424_v50 = vpop.permute.xlu0 %423 }
 0x1a3   : > { %v426_v51 = vpop.permute.xlu1 %425 }
 0x1a4   : > { %v428_v53 = vsel %vm427_vm11, %v424_v50, %v426_v51  ;;  %v429_v54 = vsel %vm427_vm11, %v426_v51, %v424_v50 }
 0x1a5   : > { %v431_v56 = vmul.f32 %v1157_v49, %v429_v54  ;;  %v1164_v57 = vadd.f32 %v432_v52, %v428_v53 }
 0x1a7   : > { %v1166_v58 = vadd.f32 %v433_v55, %v431_v56  ;;  %v436_v59 = vadd.f32 3.0, %v1164_v57 }
 0x1a9   : > { %v438_v60 = vmax.f32 %v436_v59, 0.0  ;;  %v437_v61 = vadd.f32 3.0, %v1166_v58 }
 0x1ab   : > { %v440_v62 = vmin.f32 %v438_v60, 6.0  ;;  %v439_v63 = vmax.f32 %v437_v61, 0.0 }
 0x1ad   : > { %v442_v0 = vmul.f32 %v440_v62, %v1164_v57  ;;  %v441_v1 = vmin.f32 %v439_v63, 6.0 }
 0x1af   : > { %v1171_v2 = vmul.f32 0.16666667, %v442_v0  ;;  %v443_v3 = vmul.f32 %v441_v1, %v1166_v58 }
 0x1b1   : > { %446 = vrot.lane.b32.xlu1 %v1171_v2, %s1033_s27  ;;  %454 = vrot.lane.b32.xlu2 %v1171_v2, %s1034_s28  ;;  %v1178_v4 = vmul.f32 0.16666667, %v443_v3  ;;  %v1252_v3 = vld [vmem:[%s1405_s4] sm:$0xff] }
 0x1b3   : > { %456 = vrot.lane.b32.xlu0 %v1178_v4, %s1034_s28 }
 0x1b9   : > { %448 = vrot.lane.b32.xlu2 %v1178_v4, %s1033_s27 }
 0x20b   : > { %v455_v5 = vpop.permute.xlu2 %454 }
 0x213   : > { %v449_v12 = vpop.permute.xlu2 %448 }
 0x223   : > { %v447_v6 = vpop.permute.xlu1 %446 }
 0x224   : > { %v450_v15 = vsel %vm318_vm1, %v447_v6, %v449_v12  ;;  %v451_v16 = vsel %vm318_vm1, %v449_v12, %v447_v6 }
 0x225   : > { %v457_v8 = vpop.permute.xlu0 %456  ;;  %v452_v17 = vmul.f32 %v1100_v19, %v451_v16  ;;  %v453_v18 = vmul.f32 %v1105_v21, %v450_v15 }
 0x226   : > { %v458_v9 = vsel %vm332_vm5, %v455_v5, %v457_v8  ;;  %v459_v10 = vsel %vm332_vm5, %v457_v8, %v455_v5  ;;  %v1263_v8 = vld [vmem:[%s1405_s4 + $0x8] sm:$0xff] }
 0x227   : > { %v460_v13 = vmul.f32 %v1109_v23, %v458_v9  ;;  %v461_v14 = vmul.f32 %v1111_v24, %v459_v10  ;;  %v1272_v9 = vld [vmem:[%s1405_s4 + $0x10] sm:$0xff] }
 0x229   : > { %482 = vmatpush.msrb.mxu2 %v460_v13  ;;  %505 = vmatpush.msrb.mxu3 %v461_v14 }
 0x22b   : > { %483 = vmatpush.msrb.mxu2 %v1171_v2  ;;  %506 = vmatpush.msrb.mxu3 %v1178_v4 }
 0x22d   : > { %484 = vmatpush.msrb.mxu2 %v452_v17  ;;  %507 = vmatpush.msrb.mxu3 %v453_v18 }
 0x22e   : > { %979 = vmatmul.msk.f32.vlgmr.msrb.gmra.mxu2 %vm462_vm12, %v1201_v20  ;;  %981 = vmatmul.msk.f32.vlgmr.msrb.gmra.mxu3 %vm462_vm12, %v1201_v20 }
 0x236   : > { %982 = vmatmul.msk.f32.gmra.mxu3 %vm462_vm12, %v1210_v22  ;;  %980 = vmatmul.msk.f32.gmra.mxu2 %vm462_vm12, %v1210_v22 }
 0x2b1   : > { %v486_v25 = vpop.f32.mrf.mxu2  ;;  %v509_v26 = vpop.f32.mrf.mxu3 }
 0x2b2   : > { %517 = vrot.lane.b32.xlu1 %v509_v26, %s1036_s10  ;;  %515 = vrot.lane.b32.xlu0 %v486_v25, %s1036_s10  ;;  %v533_v35 = vrot.slane %v486_v25, 4  ;;  %v534_v38 = vrot.slane %v509_v26, 4 }
 0x2b9   : > { %v512_v27 = vpop.f32.mrf.mxu3  ;;  %v489_v28 = vpop.f32.mrf.mxu2 }
 0x2ba   : > { %525 = vrot.lane.b32.xlu0 %v512_v27, %s1037_s11  ;;  %523 = vrot.lane.b32.xlu2 %v489_v28, %s1037_s11 }
 0x314   : > { %v524_v36 = vpop.permute.xlu2 %523 }
 0x324   : > { %v518_v31 = vpop.permute.xlu1 %517  ;;  %v516_v32 = vpop.permute.xlu0 %515 }
 0x325   : > { %v520_v33 = vsel %vm418_vm9, %v518_v31, %v516_v32  ;;  %v519_v37 = vsel %vm418_vm9, %v516_v32, %v518_v31 }
 0x326   : > { %v521_v34 = vmul.f32 %v1148_v45, %v520_v33  ;;  %v538_v42 = vadd.f32 %v534_v38, %v519_v37 }
 0x328   : > { %v537_v40 = vadd.f32 %v533_v35, %v521_v34 }
 0x32c   : > { %v526_v39 = vpop.permute.xlu0 %525 }
 0x32d   : > { %v527_v41 = vsel %vm427_vm11, %v524_v36, %v526_v39  ;;  %v528_v7 = vsel %vm427_vm11, %v526_v39, %v524_v36 }
 0x32e   : > { %v530_v43 = vmul.f32 %v1157_v49, %v528_v7  ;;  %v539_v44 = vadd.f32 %v537_v40, %v527_v41 }
 0x330   : > { %v540_v46 = vadd.f32 %v538_v42, %v530_v43  ;;  %v547_v47 = vmul.f32 %v543_v29, %v539_v44 }
 0x332   : > { %549 = vrot.lane.b32.xlu0 %v547_v47, %s1033_s27  ;;  %557 = vrot.lane.b32.xlu1 %v547_v47, %s1034_s28  ;;  %v548_v48 = vmul.f32 %v544_v30, %v540_v46  ;;  %v567_v0 = vrot.slane %v547_v47, 4 }
 0x334   : > { %559 = vrot.lane.b32.xlu2 %v548_v48, %s1034_s28  ;;  %v568_v1 = vrot.slane %v548_v48, 4 }
 0x33a   : > { %551 = vrot.lane.b32.xlu1 %v548_v48, %s1033_s27 }
 0x38e   : > { %v560_v50 = vpop.permute.xlu2 %559 }
 0x3a4   : > { %v558_v51 = vpop.permute.xlu1 %557  ;;  %v550_v56 = vpop.permute.xlu0 %549 }
 0x3a5   : > { %v561_v52 = vsel %vm332_vm5, %v558_v51, %v560_v50  ;;  %v562_v53 = vsel %vm332_vm5, %v560_v50, %v558_v51 }
 0x3a6   : > { %v563_v54 = vmul.f32 %v1109_v23, %v561_v52  ;;  %v564_v55 = vmul.f32 %v1111_v24, %v562_v53 }
 0x3a8   : > { %983 = vmatpush.msk.msra.mxu2 %vm343_vm6, %v563_v54  ;;  %987 = vmatpush.msk.msra.mxu3 %vm343_vm6, %v564_v55 }
 0x3ac   : > { %v552_v59 = vpop.permute.xlu1 %551 }
 0x3ad   : > { %v553_v60 = vsel %vm318_vm1, %v550_v56, %v552_v59  ;;  %v554_v61 = vsel %vm318_vm1, %v552_v59, %v550_v56 }
 0x3ae   : > { %v555_v62 = vmul.f32 %v1100_v19, %v554_v61  ;;  %v556_v63 = vmul.f32 %v1105_v21, %v553_v60 }
 0x3b0   : > { %v571_v5 = vsel %vm343_vm6, %v555_v62, %v567_v0  ;;  %v572_v6 = vsel %vm343_vm6, %v556_v63, %v568_v1 }
 0x3b1   : > { %603 = vmatpush.msra.mxu2 %v571_v5  ;;  %629 = vmatpush.msra.mxu3 %v572_v6 }
 0x3b2   : > { %984 = vmatmul.msk.f32.vlgmr.msra.gmra.mxu2 %vm346_vm7, %v1252_v3  ;;  %988 = vmatmul.msk.f32.vlgmr.msra.gmra.mxu3 %vm346_vm7, %v1252_v3 }
 0x3ba   : > { %985 = vmatmul.msk.f32.gmra.mxu2 %vm346_vm7, %v1263_v8  ;;  %989 = vmatmul.msk.f32.gmra.mxu3 %vm346_vm7, %v1263_v8 }
 0x3c2   : > { %986 = vmatmul.msk.f32.gmra.mxu2 %vm346_vm7, %v1272_v9  ;;  %990 = vmatmul.msk.f32.gmra.mxu3 %vm346_vm7, %v1272_v9 }
 0x435   : > { %v605_v10 = vpop.f32.mrf.mxu2  ;;  %v631_v12 = vpop.f32.mrf.mxu3 }
 0x436   : > { %642 = vrot.lane.b32.xlu0 %v631_v12, %s1036_s10  ;;  %640 = vrot.lane.b32.xlu2 %v605_v10, %s1036_s10 }
 0x43d   : > { %v608_v13 = vpop.f32.mrf.mxu2  ;;  %v634_v14 = vpop.f32.mrf.mxu3 }
 0x445   : > { %v611_v15 = vpop.f32.mrf.mxu2  ;;  %v637_v16 = vpop.f32.mrf.mxu3 }
 0x446   : > { %648 = vrot.lane.b32.xlu1 %v611_v15, %s1037_s11  ;;  %650 = vrot.lane.b32.xlu2 %v637_v16, %s1037_s11 }
 0x490   : > { %v641_v17 = vpop.permute.xlu2 %640 }
 0x4a0   : > { %v651_v27 = vpop.permute.xlu2 %650 }
 0x4a8   : > { %v643_v18 = vpop.permute.xlu0 %642 }
 0x4a9   : > { %v645_v25 = vsel %vm418_vm9, %v643_v18, %v641_v17  ;;  %v644_v28 = vsel %vm418_vm9, %v641_v17, %v643_v18 }
 0x4aa   : > { %v646_v26 = vmul.f32 %v1148_v45, %v645_v25  ;;  %v657_v33 = vadd.f32 %v644_v28, %v634_v14 }
 0x4ac   : > { %v656_v29 = vadd.f32 %v646_v26, %v608_v13 }
 0x4b8   : > { %v649_v30 = vpop.permute.xlu1 %648 }
 0x4b9   : > { %v652_v31 = vsel %vm427_vm11, %v649_v30, %v651_v27  ;;  %v653_v32 = vsel %vm427_vm11, %v651_v27, %v649_v30  ;;  %v763_v27 = vld.sshfl [vmem:[#allocation1] sm:$0xff pattern:$0x75316420] }
 0x4ba   : > { %v655_v34 = vmul.f32 %v1157_v49, %v653_v32  ;;  %v658_v35 = vadd.f32 %v656_v29, %v652_v31  ;;  %v764_v31 = vld.sshfl [vmem:[#allocation1 + $0x8] sm:$0xff pattern:$0x75316420] }
 0x4bc   : > { %v659_v36 = vadd.f32 %v657_v33, %v655_v34  ;;  %v660_v37 = vsub.f32 %v1171_v2, %v658_v35 }
 0x4be   : > { %v661_v38 = vsub.f32 %v1178_v4, %v659_v36  ;;  %v662_v39 = vadd.f32 %v660_v37, %v1164_v57 }
 0x4c0   : > { %v663_v40 = vadd.f32 %v661_v38, %v1166_v58  ;;  %v664_v41 = vadd.f32 3.0, %v662_v39 }
 0x4c2   : > { %v665_v7 = vadd.f32 3.0, %v663_v40  ;;  %v666_v42 = vmax.f32 %v664_v41, 0.0 }
 0x4c4   : > { %v668_v43 = vmin.f32 %v666_v42, 6.0  ;;  %v667_v44 = vmax.f32 %v665_v7, 0.0 }
 0x4c6   : > { %v670_v46 = vmul.f32 %v668_v43, %v662_v39  ;;  %v669_v47 = vmin.f32 %v667_v44, 6.0 }
 0x4c8   : > { %v1296_v48 = vmul.f32 0.16666667, %v670_v46  ;;  %v671_v50 = vmul.f32 %v669_v47, %v663_v40 }
 0x4ca   : > { %674 = vrot.lane.b32.xlu2 %v1296_v48, %s1033_s27  ;;  %682 = vrot.lane.b32.xlu0 %v1296_v48, %s1034_s28  ;;  %v1302_v2 = vmul.f32 0.16666667, %v671_v50 }
 0x4cc   : > { %684 = vrot.lane.b32.xlu1 %v1302_v2, %s1034_s28 }
 0x4d2   : > { %676 = vrot.lane.b32.xlu0 %v1302_v2, %s1033_s27 }
 0x524   : > { %v675_v56 = vpop.permute.xlu2 %674 }
 0x53c   : > { %v683_v4 = vpop.permute.xlu0 %682 }
 0x53e   : > { %v685_v51 = vpop.permute.xlu1 %684 }
 0x53f   : > { %v686_v52 = vsel %vm332_vm5, %v683_v4, %v685_v51  ;;  %v687_v53 = vsel %vm332_vm5, %v685_v51, %v683_v4 }
 0x540   : > { %v688_v54 = vmul.f32 %v1109_v23, %v686_v52  ;;  %v689_v55 = vmul.f32 %v1111_v24, %v687_v53 }
 0x542   : > { %703 = vmatpush.msrb.mxu0 %v688_v54  ;;  %726 = vmatpush.msrb.mxu1 %v689_v55 }
 0x544   : > { %704 = vmatpush.msrb.mxu0 %v1296_v48  ;;  %727 = vmatpush.msrb.mxu1 %v1302_v2  ;;  %v677_v59 = vpop.permute.xlu0 %676 }
 0x545   : > { %v678_v60 = vsel %vm318_vm1, %v675_v56, %v677_v59  ;;  %v679_v61 = vsel %vm318_vm1, %v677_v59, %v675_v56 }
 0x546   : > { %v680_v62 = vmul.f32 %v1100_v19, %v679_v61  ;;  %v681_v63 = vmul.f32 %v1105_v21, %v678_v60 }
 0x548   : > { %705 = vmatpush.msrb.mxu0 %v680_v62  ;;  %728 = vmatpush.msrb.mxu1 %v681_v63 }
 0x549   : > { %991 = vmatmul.msk.f32.vlgmr.msrb.gmra.mxu0 %vm462_vm12, %v1201_v20  ;;  %993 = vmatmul.msk.f32.vlgmr.msrb.gmra.mxu1 %vm462_vm12, %v1201_v20 }
 0x551   : > { %992 = vmatmul.msk.f32.gmra.mxu0 %vm462_vm12, %v1210_v22  ;;  %994 = vmatmul.msk.f32.gmra.mxu1 %vm462_vm12, %v1210_v22 }
 0x5c6   : > { %v707_v0 = vpop.f32.mrf.mxu0  ;;  %v730_v1 = vpop.f32.mrf.mxu1 }
 0x5c7   : > { %736 = vrot.lane.b32.xlu1 %v707_v0, %s1036_s10  ;;  %738 = vrot.lane.b32.xlu2 %v730_v1, %s1036_s10  ;;  %v754_v22 = vrot.slane %v707_v0, 4  ;;  %v755_v15 = vrot.slane %v730_v1, 4 }
 0x5ce   : > { %v710_v5 = vpop.f32.mrf.mxu0  ;;  %v733_v6 = vpop.f32.mrf.mxu1 }
 0x5cf   : > { %744 = vrot.lane.b32.xlu0 %v710_v5, %s1037_s11  ;;  %746 = vrot.lane.b32.xlu1 %v733_v6, %s1037_s11 }
 0x621   : > { %v739_v10 = vpop.permute.xlu2 %738 }
 0x639   : > { %v737_v20 = vpop.permute.xlu1 %736 }
 0x63a   : > { %v741_v12 = vsel %vm418_vm9, %v739_v10, %v737_v20  ;;  %v740_v14 = vsel %vm418_vm9, %v737_v20, %v739_v10 }
 0x63b   : > { %v742_v13 = vmul.f32 %v1148_v45, %v741_v12  ;;  %v759_v28 = vadd.f32 %v755_v15, %v740_v14 }
 0x63d   : > { %v758_v17 = vadd.f32 %v754_v22, %v742_v13 }
 0x641   : > { %v745_v16 = vpop.permute.xlu0 %744  ;;  %v747_v18 = vpop.permute.xlu1 %746 }
 0x642   : > { %v748_v25 = vsel %vm427_vm11, %v745_v16, %v747_v18  ;;  %v749_v26 = vsel %vm427_vm11, %v747_v18, %v745_v16 }
 0x643   : > { %v751_v29 = vmul.f32 %v1157_v49, %v749_v26  ;;  %v760_v30 = vadd.f32 %v758_v17, %v748_v25 }
 0x645   : > { %v761_v32 = vadd.f32 %v759_v28, %v751_v29  ;;  %v767_v33 = vmul.f32 %v763_v27, %v760_v30 }
 0x647   : > { %769 = vrot.lane.b32.xlu1 %v767_v33, %s1033_s27  ;;  %777 = vrot.lane.b32.xlu2 %v767_v33, %s1034_s28  ;;  %v768_v34 = vmul.f32 %v764_v31, %v761_v32  ;;  %v787_v47 = vrot.slane %v767_v33, 4 }
 0x649   : > { %779 = vrot.lane.b32.xlu0 %v768_v34, %s1034_s28  ;;  %v788_v50 = vrot.slane %v768_v34, 4 }
 0x64f   : > { %771 = vrot.lane.b32.xlu2 %v768_v34, %s1033_s27  ;;  %s244_s27 = scalar_lea.vmem %s1406_s5, %s1007_s24 }
 0x6a1   : > { %v778_v35 = vpop.permute.xlu2 %777 }
 0x6a9   : > { %v772_v36 = vpop.permute.xlu2 %771 }
 0x6b9   : > { %v770_v37 = vpop.permute.xlu1 %769 }
 0x6ba   : > { %v773_v38 = vsel %vm318_vm1, %v770_v37, %v772_v36  ;;  %v774_v39 = vsel %vm318_vm1, %v772_v36, %v770_v37 }
 0x6bb   : > { %v780_v40 = vpop.permute.xlu0 %779  ;;  %v775_v41 = vmul.f32 %v1100_v19, %v774_v39  ;;  %v776_v7 = vmul.f32 %v1105_v21, %v773_v38 }
 0x6bc   : > { %v781_v42 = vsel %vm332_vm5, %v778_v35, %v780_v40  ;;  %v782_v43 = vsel %vm332_vm5, %v780_v40, %v778_v35 }
 0x6bd   : > { %v783_v44 = vmul.f32 %v1109_v23, %v781_v42  ;;  %v784_v46 = vmul.f32 %v1111_v24, %v782_v43  ;;  %v791_v19 = vsel %vm343_vm6, %v775_v41, %v787_v47  ;;  %v792_v21 = vsel %vm343_vm6, %v776_v7, %v788_v50 }
 0x6bf   : > { %995 = vmatpush.msk.msra.mxu0 %vm343_vm6, %v783_v44  ;;  %999 = vmatpush.msk.msra.mxu1 %vm343_vm6, %v784_v46 }
 0x6c1   : > { %814 = vmatpush.msra.mxu0 %v791_v19  ;;  %840 = vmatpush.msra.mxu1 %v792_v21 }
 0x6c2   : > { %996 = vmatmul.msk.f32.vlgmr.msra.gmra.mxu0 %vm346_vm7, %v1252_v3  ;;  %1000 = vmatmul.msk.f32.vlgmr.msra.gmra.mxu1 %vm346_vm7, %v1252_v3 }
 0x6ca   : > { %1001 = vmatmul.msk.f32.gmra.mxu1 %vm346_vm7, %v1263_v8  ;;  %997 = vmatmul.msk.f32.gmra.mxu0 %vm346_vm7, %v1263_v8 }
 0x6d2   : > { %1002 = vmatmul.msk.f32.gmra.mxu1 %vm346_vm7, %v1272_v9  ;;  %998 = vmatmul.msk.f32.gmra.mxu0 %vm346_vm7, %v1272_v9 }
 0x73f   : > { %v816_v23 = vpop.f32.mrf.mxu0  ;;  %v842_v24 = vpop.f32.mrf.mxu1 }
 0x740   : > { %853 = vrot.lane.b32.xlu1 %v842_v24, %s1036_s10  ;;  %851 = vrot.lane.b32.xlu0 %v816_v23, %s1036_s10 }
 0x747   : > { %v845_v4 = vpop.f32.mrf.mxu1  ;;  %v819_v3 = vpop.f32.mrf.mxu0 }
 0x74f   : > { %v848_v51 = vpop.f32.mrf.mxu1  ;;  %v822_v52 = vpop.f32.mrf.mxu0 }
 0x750   : > { %861 = vrot.lane.b32.xlu0 %v848_v51, %s1037_s11  ;;  %859 = vrot.lane.b32.xlu2 %v822_v52, %s1037_s11 }
 0x7aa   : > { %v860_v55 = vpop.permute.xlu2 %859 }
 0x7b2   : > { %v854_v8 = vpop.permute.xlu1 %853  ;;  %v852_v53 = vpop.permute.xlu0 %851 }
 0x7b3   : > { %v856_v54 = vsel %vm418_vm9, %v854_v8, %v852_v53  ;;  %v855_v56 = vsel %vm418_vm9, %v852_v53, %v854_v8 }
 0x7b4   : > { %v857_v9 = vmul.f32 %v1148_v45, %v856_v54  ;;  %v868_v63 = vadd.f32 %v855_v56, %v845_v4 }
 0x7b6   : > { %v867_v60 = vadd.f32 %v857_v9, %v819_v3 }
 0x7c2   : > { %v862_v59 = vpop.permute.xlu0 %861 }
 0x7c3   : > { %v863_v61 = vsel %vm427_vm11, %v860_v55, %v862_v59  ;;  %v864_v62 = vsel %vm427_vm11, %v862_v59, %v860_v55 }
 0x7c4   : > { %v866_v0 = vmul.f32 %v1157_v49, %v864_v62  ;;  %v869_v1 = vadd.f32 %v867_v60, %v863_v61 }
 0x7c6   : > { %v870_v5 = vadd.f32 %v868_v63, %v866_v0  ;;  %v871_v45 = vsub.f32 %v1296_v48, %v869_v1 }
 0x7c8   : > { %v872_v6 = vsub.f32 %v1302_v2, %v870_v5  ;;  %v873_v10 = vadd.f32 %v871_v45, %v1164_v57 }
 0x7ca   : > { %v874_v20 = vadd.f32 %v872_v6, %v1166_v58  ;;  %v875_v12 = vadd.f32 3.0, %v873_v10 }
 0x7cc   : > { %v876_v13 = vadd.f32 3.0, %v874_v20  ;;  %v877_v22 = vmax.f32 %v875_v12, 0.0 }
 0x7ce   : > { %v878_v14 = vmax.f32 %v876_v13, 0.0  ;;  %v879_v11 = vmin.f32 %v877_v22, 6.0 }
 0x7d0   : > { %v880_v15 = vmin.f32 %v878_v14, 6.0  ;;  %v881_v16 = vmul.f32 %v879_v11, %v873_v10 }
 0x7d2   : > { %v882_v49 = vmul.f32 %v880_v15, %v874_v20  ;;  %v883_v48 = vmul.f32 0.16666667, %v881_v16 }
 0x7d4   : > { %v884_v17 = vmul.f32 0.16666667, %v882_v49  ;;  %885 = vst [vmem:[%s244_s27] sm:$0xff] %v883_v48 }
 0x7d6   : > { %886 = vst [vmem:[%s244_s27 + $0x8] sm:$0xff] %v884_v17 }
 0x7d7 PF: > { %s15_s18 = sadd.s32 1, %s1031_s18  }
 0x7d8   : > { %p12_p4 = scmp.ge.s32.totalorder %s15_s18, 4  }
 0x7da   :  { %14 = sbr.rel (!%p12_p4) target bundleno = 1 (0x1), region = 74 }

</bundles_post_ra>
